<compile_context>
chip_gen: v6e
topology: v6e:2x2x1
jax: 0.10.0
libtpu: 0.0.40
codegen_flags: <defaults>
</compile_context>

<pallas_src>
import functools

import jax
import jax.numpy as jnp
from jax.experimental import pallas as pl
from jax.experimental.pallas import tpu as pltpu


def _round_up(x, m):
    return ((x + m - 1) // m) * m


def _dis_tc_kernel(hs_ref, hu_ref, wpk_ref, out_ref, *, s_dim):
    """Fused sigmoid(fc2(sigmoid(fc1(cat(hs, hu)))))."""
    two_s = 2 * s_dim

    # Concatenate the two halves in-register (folds the torch.cat away) and cast to
    # the MXU-native weight dtype (bf16).  One K = 2*S_dim matmul instead of two.
    h = jnp.concatenate([hs_ref[...], hu_ref[...]], axis=1).astype(wpk_ref.dtype)

    # Packed parameters:
    #   rows [0 : 2S)        = W1^T            (in, out) layout, tile aligned
    #   rows [2S : 2S+16)    = extras tile: row0 = b1, row1 = w2, row2[0] = b2
    w1 = wpk_ref[0:two_s, :]                                   # (2S, nhF) bf16
    ex = wpk_ref[two_s:two_s + 16, :].astype(jnp.float32)      # (16, nhF) f32
    b1 = ex[0:1, :]                                            # (1, nhF)
    w2 = ex[1:2, :]                                            # (1, nhF)
    b2 = ex[2:3, 0:1]                                          # (1, 1)

    # fc1 on the MXU, f32 accumulate.
    y1 = jnp.dot(h, w1, preferred_element_type=jnp.float32) + b1
    # Sigmoid via tanh: uses the EUP slot, no f32 divide on the VALU path.
    h1 = 0.5 * (jnp.tanh(0.5 * y1) + 1.0)                      # (bb, nhF) f32

    # fc2 (output width 1): lane reduction against the weight row.
    y2 = jnp.sum(h1 * w2, axis=1, keepdims=True) + b2          # (bb, 1)
    out_ref[...] = (0.5 * (jnp.tanh(0.5 * y2) + 1.0)).astype(out_ref.dtype)


@functools.partial(jax.jit, static_argnames=("block_b",))
def dis_tc_forward(wpk, hs, hu, block_b=128):
    """hs, hu: (B, S_dim) float32.  wpk: packed params (2*S_dim+16, nhF)."""
    B, s_dim = hs.shape
    two_s, nhf = wpk.shape[0] - 16, wpk.shape[1]
    assert two_s == 2 * s_dim, "packed weights do not match S_dim"

    # B tile: multiple of 8 (sublane), capped at 128 (MXU M); pad batch to the tile.
    bb = min(block_b, _round_up(B, 8))
    b_pad = _round_up(B, bb)
    if b_pad != B:
        hs = jnp.pad(hs, ((0, b_pad - B), (0, 0)))
        hu = jnp.pad(hu, ((0, b_pad - B), (0, 0)))

    itemsize = jnp.dtype(wpk.dtype).itemsize
    flops = 2 * b_pad * two_s * nhf + 2 * b_pad * nhf
    bytes_accessed = 2 * b_pad * s_dim * 4 + int(wpk.size) * itemsize + b_pad * 4

    out = pl.pallas_call(
        functools.partial(_dis_tc_kernel, s_dim=s_dim),
        out_shape=jax.ShapeDtypeStruct((b_pad, 1), hs.dtype),
        grid_spec=pltpu.PrefetchScalarGridSpec(
            num_scalar_prefetch=0,
            grid=(b_pad // bb,),
            in_specs=[
                pl.BlockSpec((bb, s_dim), lambda i: (i, 0)),          # hs tile
                pl.BlockSpec((bb, s_dim), lambda i: (i, 0)),          # hu tile
                pl.BlockSpec((two_s + 16, nhf), lambda i: (0, 0)),    # weights, resident
            ],
            out_specs=pl.BlockSpec((bb, 1), lambda i: (i, 0)),
        ),
        compiler_params=pltpu.CompilerParams(
            dimension_semantics=("parallel",)),
        cost_estimate=pl.CostEstimate(
            flops=flops,
            transcendentals=b_pad * (nhf + 1),
            bytes_accessed=bytes_accessed),
    )(hs, hu, wpk)
    return out[:B]
    # TODO(synk): for B in the many-thousands, emit a lane-dense (1, B) output and
    # transpose in the wrapper to avoid masked single-lane writebacks.


def init_dis_tc_params(key, s_dim, nhf, weight_dtype=jnp.bfloat16):
    """weights_init: Linear.weight ~ N(0, 0.02), Linear.bias = 0 (PyTorch layout),
    converted ONCE into the packed kernel layout (W1^T rows, then an aligned
    extras tile holding b1 / w2 / b2)."""
    k1, k2 = jax.random.split(key)
    w1 = 0.02 * jax.random.normal(k1, (nhf, 2 * s_dim), jnp.float32)   # fc1.weight (out, in)
    b1 = jnp.zeros((nhf,), jnp.float32)                                # fc1.bias
    w2 = 0.02 * jax.random.normal(k2, (1, nhf), jnp.float32)           # fc2.weight (out, in)
    b2 = jnp.zeros((1,), jnp.float32)                                  # fc2.bias
    torch_layout = {"w1": w1, "b1": b1, "w2": w2, "b2": b2}

    extras = jnp.zeros((16, nhf), jnp.float32)
    extras = extras.at[0, :].set(b1)          # row 0: b1
    extras = extras.at[1, :].set(w2[0])       # row 1: w2
    extras = extras.at[2, 0].set(b2[0])       # row 2, lane 0: b2
    wpk = jnp.concatenate([w1.T, extras], axis=0).astype(weight_dtype)  # (2S+16, nhF)
    return wpk, torch_layout


def _reference(tp, hs, hu):
    h = jnp.concatenate([hs, hu], axis=1)
    h1 = jax.nn.sigmoid(h @ tp["w1"].T + tp["b1"])
    return jax.nn.sigmoid(h1 @ tp["w2"].T + tp["b2"])


if __name__ == "__main__":
    S_DIM = 64    # opt.S_dim
    NHF = 128     # opt.nhF

    key = jax.random.PRNGKey(0)
    kp, ks, ku = jax.random.split(key, 3)
    wpk, torch_params = init_dis_tc_params(kp, S_DIM, NHF)

    # Batched call (exercises the parallel B-grid path, 2 tiles of 128 rows).
    B = 256
    hs = jax.random.normal(ks, (B, S_DIM), jnp.float32)
    hu = jax.random.normal(ku, (B, S_DIM), jnp.float32)
    out = dis_tc_forward(wpk, hs, hu)
    jax.block_until_ready(out)
    ref = _reference(torch_params, hs, hu)
    assert out.shape == (B, 1)
    assert jnp.allclose(out, ref, atol=5e-3, rtol=0.0), float(jnp.max(jnp.abs(out - ref)))

    # Odd small batch (exercises the padding path).
    B2 = 10
    hs2 = jax.random.normal(jax.random.PRNGKey(7), (B2, S_DIM), jnp.float32)
    hu2 = jax.random.normal(jax.random.PRNGKey(8), (B2, S_DIM), jnp.float32)
    out2 = dis_tc_forward(wpk, hs2, hu2)
    jax.block_until_ready(out2)
    ref2 = _reference(torch_params, hs2, hu2)
    assert out2.shape == (B2, 1)
    assert jnp.allclose(out2, ref2, atol=5e-3, rtol=0.0)

    print("KERNEL_OK")
</pallas_src>

<mosaic_0001>
module attributes {stable_mosaic.version = 11 : i64} {
  func.func @_dis_tc_kernel(%arg0: i32, %arg1: memref<128x64xf32, #tpu.memory_space<vmem>>, %arg2: memref<128x64xf32, #tpu.memory_space<vmem>>, %arg3: memref<144x128xbf16, #tpu.memory_space<vmem>>, %arg4: memref<128x1xf32, #tpu.memory_space<vmem>>) attributes {dimension_semantics = [#tpu.dimension_semantics<parallel>], iteration_bounds = array<i64: 2>, scalar_prefetch = 0 : i64, scratch_operands = 0 : i64, tpu.core_type = #tpu.core_type<tc>, window_params = [{transform_indices = @transform_0, window_bounds = array<i64: 128, 64>}, {transform_indices = @transform_1, window_bounds = array<i64: 128, 64>}, {pipeline_mode = #tpu.pipeline_mode<synchronous>, transform_indices = @transform_2, window_bounds = array<i64: 144, 128>}, {transform_indices = @transform_3, window_bounds = array<i64: 128, 1>}]} {
    %c0 = arith.constant 0 : index
    %c0_0 = arith.constant 0 : index
    %0 = vector.load %arg1[%c0, %c0_0] : memref<128x64xf32, #tpu.memory_space<vmem>>, vector<128x64xf32>
    %c0_1 = arith.constant 0 : index
    %c0_2 = arith.constant 0 : index
    %1 = vector.load %arg2[%c0_1, %c0_2] : memref<128x64xf32, #tpu.memory_space<vmem>>, vector<128x64xf32>
    %2 = tpu.concatenate %0, %1 in 1 : vector<128x64xf32>, vector<128x64xf32> -> vector<128x128xf32>
    %3 = arith.truncf %2 : vector<128x128xf32> to vector<128x128xbf16>
    %c0_3 = arith.constant 0 : index
    %c0_4 = arith.constant 0 : index
    %4 = vector.load %arg3[%c0_3, %c0_4] : memref<144x128xbf16, #tpu.memory_space<vmem>>, vector<128x128xbf16>
    %c128 = arith.constant 128 : index
    %c0_5 = arith.constant 0 : index
    %5 = vector.load %arg3[%c128, %c0_5] : memref<144x128xbf16, #tpu.memory_space<vmem>>, vector<16x128xbf16>
    %6 = arith.extf %5 : vector<16x128xbf16> to vector<16x128xf32>
    %7 = vector.extract_strided_slice %6 {offsets = [0, 0], sizes = [1, 128], strides = [1, 1]} : vector<16x128xf32> to vector<1x128xf32>
    %8 = vector.extract_strided_slice %6 {offsets = [1, 0], sizes = [1, 128], strides = [1, 1]} : vector<16x128xf32> to vector<1x128xf32>
    %9 = vector.extract_strided_slice %6 {offsets = [2, 0], sizes = [1, 1], strides = [1, 1]} : vector<16x128xf32> to vector<1x1xf32>
    %cst = arith.constant dense<0.000000e+00> : vector<128x128xf32>
    %10 = tpu.matmul %3, %4, %cst {dimension_numbers = #tpu.dot_dimension_numbers<[1], [0], [0], [1], [0, 0, 1, 1], [], []>} : vector<128x128xbf16>, vector<128x128xbf16>, vector<128x128xf32> -> vector<128x128xf32>
    %11 = vector.broadcast %7 : vector<1x128xf32> to vector<128x128xf32>
    %12 = arith.addf %10, %11 : vector<128x128xf32>
    %cst_6 = arith.constant 5.000000e-01 : f32
    %13 = vector.broadcast %cst_6 : f32 to vector<128x128xf32>
    %14 = arith.mulf %13, %12 : vector<128x128xf32>
    %15 = math.tanh %14 : vector<128x128xf32>
    %cst_7 = arith.constant 1.000000e+00 : f32
    %16 = vector.broadcast %cst_7 : f32 to vector<128x128xf32>
    %17 = arith.addf %15, %16 : vector<128x128xf32>
    %cst_8 = arith.constant 5.000000e-01 : f32
    %18 = vector.broadcast %cst_8 : f32 to vector<128x128xf32>
    %19 = arith.mulf %18, %17 : vector<128x128xf32>
    %20 = vector.broadcast %8 : vector<1x128xf32> to vector<128x128xf32>
    %21 = arith.mulf %19, %20 : vector<128x128xf32>
    %cst_9 = arith.constant dense<0.000000e+00> : vector<128xf32>
    %22 = vector.multi_reduction <add>, %21, %cst_9 [1] : vector<128x128xf32> to vector<128xf32>
    %23 = vector.shape_cast %22 : vector<128xf32> to vector<128x1xf32>
    %24 = vector.broadcast %9 : vector<1x1xf32> to vector<128x1xf32>
    %25 = arith.addf %23, %24 : vector<128x1xf32>
    %cst_10 = arith.constant 5.000000e-01 : f32
    %26 = vector.broadcast %cst_10 : f32 to vector<128x1xf32>
    %27 = arith.mulf %26, %25 : vector<128x1xf32>
    %28 = math.tanh %27 : vector<128x1xf32>
    %cst_11 = arith.constant 1.000000e+00 : f32
    %29 = vector.broadcast %cst_11 : f32 to vector<128x1xf32>
    %30 = arith.addf %28, %29 : vector<128x1xf32>
    %cst_12 = arith.constant 5.000000e-01 : f32
    %31 = vector.broadcast %cst_12 : f32 to vector<128x1xf32>
    %32 = arith.mulf %31, %30 : vector<128x1xf32>
    %c0_13 = arith.constant 0 : index
    %c0_14 = arith.constant 0 : index
    %33 = vector.load %arg4[%c0_13, %c0_14] : memref<128x1xf32, #tpu.memory_space<vmem>>, vector<128x1xf32>
    tpu.vector_store %arg4[%c0_13, %c0_14], %32 {strides = array<i32>} : memref<128x1xf32, #tpu.memory_space<vmem>>, vector<128x1xf32>,
    return
  }
  func.func @transform_0(%arg0: i32) -> (i32, i32) {
    %c0_i32 = arith.constant 0 : i32
    %c0_i32_0 = arith.constant 0 : i32
    return %arg0, %c0_i32 : i32, i32
  }
  func.func @transform_1(%arg0: i32) -> (i32, i32) {
    %c0_i32 = arith.constant 0 : i32
    %c0_i32_0 = arith.constant 0 : i32
    return %arg0, %c0_i32 : i32, i32
  }
  func.func @transform_2(%arg0: i32) -> (i32, i32) {
    %c0_i32 = arith.constant 0 : i32
    %c0_i32_0 = arith.constant 0 : i32
    %c0_i32_1 = arith.constant 0 : i32
    return %c0_i32, %c0_i32_0 : i32, i32
  }
  func.func @transform_3(%arg0: i32) -> (i32, i32) {
    %c0_i32 = arith.constant 0 : i32
    %c0_i32_0 = arith.constant 0 : i32
    return %arg0, %c0_i32 : i32, i32
  }
}

</mosaic_0001>

<bundles_post_ra>
// kernel: dis_tc_forward.1
= control target key start
LH: loop header
LB: loop body
LE: loop exit
PB: predicated region body
PF: predicated region fallthrough
CT: control target
= control target key end

     0   :  { %s1005_s12 = smov 0   ;;  %s1215_s0 = inlined_call_operand.vmem [shape: f32[256,64], index: 0, kind: input, shape index: {}]   ;;  %s1216_s1 = inlined_call_operand.vmem [shape: f32[256,64], index: 1, kind: input, shape index: {}]   ;;  %s1217_s2 = inlined_call_operand.vmem [shape: bf16[144,128], index: 2, kind: input, shape index: {}]   ;;  %s1218_s3 = inlined_call_operand.vmem [shape: f32[256,1], index: 3, kind: output, shape index: {}]  }
   0x1 LB: > { %s770_s13 = sadd.s32 4294967295, %s982_s12   ;;  %p774_p0 = scmp.ge.s32.totalorder %s982_s12, 1  ;;  %s982_s12 = sphi %s1005_s12, %s13_s12  }
   0x2   : > { %p149_p1 = scmp.lt.s32.totalorder %s982_s12, 3 }
   0x4   : > { %p150_p2 = pnand %p774_p0, %p149_p1 }
   0x5   : > { %s775_s14 = sshll.u32 (!%p150_p2), %s770_s13, 4  ;;  %s984_s27 = smov (!%p150_p2), 64  }
   0x6   : > { %153 = sbr.rel (%p150_p2) target bundleno = 550 (0x226), region = 32  ;;  %p179_p3 = scmp.lt.s32.totalorder (!%p150_p2), %s775_s14, 31 }
   0xb   : > { %v904_v0 = vld [vmem:[%s1217_s2 + $0x38] sm:$0xff]   ;;  %v905_v1 = vld [vmem:[%s1217_s2 + $0x30] sm:$0xff]   ;;  %s1220_s14 = smov (!%p179_p3, %s775_s14), 31  ;;  %v906_v2 = vld [vmem:[%s1217_s2 + $0x28] sm:$0xff]   ;;  %vm293_vm0 = vcmask 523264   ;;  %vm685_vm1 = vcmask 7168  }
   0xc   : > { %807 = vmatprep.subr.bf16.mxu0 %v904_v0  ;;  %839 = vmatprep.subr.bf16.mxu1 %v904_v0  ;;  %s1019_s19 = sshll.u32 %s1220_s14, 3  ;;  %v907_v13 = vld [vmem:[%s1217_s2 + $0x20] sm:$0xff]   ;;  %v908_v20 = vld [vmem:[%s1217_s2 + $0x18] sm:$0xff]   ;;  %v909_v27 = vld [vmem:[%s1217_s2 + $0x10] sm:$0xff]  }
   0xd   : > { %808 = vmatpush3.bf16.msra.mxu0 %v904_v0  ;;  %847 = vmatpush3.bf16.msra.mxu1 %v904_v0  ;;  %s1028_s24 = scalar_lea.vmem %s1216_s1, %s1019_s19  ;;  %v910_v30 = vld [vmem:[%s1217_s2 + $0x8] sm:$0xff]   ;;  %v911_v31 = vld [vmem:[%s1217_s2] sm:$0xff]   ;;  %s1073_s11 = scalar_lea.vmem %s1215_s0, %s1019_s19 }
   0xe   : > { %809 = vmatprep.subr.bf16.mxu0 %v905_v1  ;;  %840 = vmatprep.subr.bf16.mxu1 %v905_v1  ;;  %v213_v3 = vld [vmem:[%s1028_s24] sm:$0xff]  ;;  %v214_v4 = vld [vmem:[%s1028_s24 + $0x8] sm:$0xff]  ;;  %v215_v5 = vld [vmem:[%s1028_s24 + $0x10] sm:$0xff]  ;;  %s1171_s17 = scalar_lea.vmem %s1218_s3, %s1019_s19 }
   0xf   : > { %v864_v6 = vpack.i.bf16 %v214_v4, %v213_v3  ;;  %v216_v7 = vld [vmem:[%s1028_s24 + $0x18] sm:$0xff]  ;;  %v221_v8 = vld [vmem:[%s1028_s24 + $0x40] sm:$0xff]  ;;  %v222_v9 = vld [vmem:[%s1028_s24 + $0x48] sm:$0xff] }
  0x10   : > { %v874_v10 = vpack.i.bf16 %v216_v7, %v215_v5  ;;  %v223_v11 = vld [vmem:[%s1028_s24 + $0x50] sm:$0xff]  ;;  %v224_v12 = vld [vmem:[%s1028_s24 + $0x58] sm:$0xff]  ;;  %v869_v14 = vpack.i.bf16 %v222_v9, %v221_v8  ;;  %v217_v16 = vld [vmem:[%s1028_s24 + $0x20] sm:$0xff] }
  0x11   : > { %810 = vmatpush3.bf16.msra.mxu0 %v905_v1  ;;  %848 = vmatpush3.bf16.msra.mxu1 %v905_v1  ;;  %v879_v15 = vpack.i.bf16 %v224_v12, %v223_v11  ;;  %v218_v17 = vld [vmem:[%s1028_s24 + $0x28] sm:$0xff]  ;;  %v225_v18 = vld [vmem:[%s1028_s24 + $0x60] sm:$0xff]  ;;  %v219_v22 = vld [vmem:[%s1028_s24 + $0x30] sm:$0xff] }
  0x12   : > { %811 = vmatprep.subr.bf16.mxu0 %v906_v2  ;;  %841 = vmatprep.subr.bf16.mxu1 %v906_v2  ;;  %v226_v19 = vld [vmem:[%s1028_s24 + $0x68] sm:$0xff]  ;;  %v884_v21 = vpack.i.bf16 %v218_v17, %v217_v16  ;;  %v220_v23 = vld [vmem:[%s1028_s24 + $0x38] sm:$0xff]  ;;  %v227_v25 = vld [vmem:[%s1028_s24 + $0x70] sm:$0xff] }
  0x13   : > { %865 = vrot.lane.b32.xlu0 %v864_v6, %s984_s27  ;;  %875 = vrot.lane.b32.xlu1 %v874_v10, %s984_s27  ;;  %v889_v24 = vpack.i.bf16 %v226_v19, %v225_v18  ;;  %v228_v26 = vld [vmem:[%s1028_s24 + $0x78] sm:$0xff]  ;;  %v894_v28 = vpack.i.bf16 %v220_v23, %v219_v22  ;;  %v197_v33 = vld [vmem:[%s1073_s11] sm:$0xff] }
  0x14   : > { %v899_v29 = vpack.i.bf16 %v228_v26, %v227_v25  ;;  %v198_v34 = vld [vmem:[%s1073_s11 + $0x8] sm:$0xff]  ;;  %v199_v38 = vld [vmem:[%s1073_s11 + $0x10] sm:$0xff]  ;;  %v200_v39 = vld [vmem:[%s1073_s11 + $0x18] sm:$0xff] }
  0x15   : > { %812 = vmatpush3.bf16.msra.mxu0 %v906_v2  ;;  %849 = vmatpush3.bf16.msra.mxu1 %v906_v2  ;;  %v205_v48 = vld [vmem:[%s1073_s11 + $0x40] sm:$0xff]  ;;  %v206_v49 = vld [vmem:[%s1073_s11 + $0x48] sm:$0xff]  ;;  %v207_v54 = vld [vmem:[%s1073_s11 + $0x50] sm:$0xff] }
  0x16   : > { %813 = vmatprep.subr.bf16.mxu0 %v907_v13  ;;  %842 = vmatprep.subr.bf16.mxu1 %v907_v13  ;;  %v208_v55 = vld [vmem:[%s1073_s11 + $0x58] sm:$0xff]  ;;  %v201_v0 = vld [vmem:[%s1073_s11 + $0x20] sm:$0xff]  ;;  %v202_v1 = vld [vmem:[%s1073_s11 + $0x28] sm:$0xff] }
  0x17   : > { %870 = vrot.lane.b32.xlu0 %v869_v14, %s984_s27  ;;  %880 = vrot.lane.b32.xlu1 %v879_v15, %s984_s27  ;;  %v209_v6 = vld [vmem:[%s1073_s11 + $0x60] sm:$0xff]  ;;  %v210_v7 = vld [vmem:[%s1073_s11 + $0x68] sm:$0xff] }
  0x18   : > { %v203_v14 = vld [vmem:[%s1073_s11 + $0x30] sm:$0xff]  ;;  %v204_v15 = vld [vmem:[%s1073_s11 + $0x38] sm:$0xff] }
  0x19   : > { %814 = vmatpush3.bf16.msra.mxu0 %v907_v13  ;;  %850 = vmatpush3.bf16.msra.mxu1 %v907_v13  ;;  %v211_v22 = vld [vmem:[%s1073_s11 + $0x70] sm:$0xff]  ;;  %v212_v23 = vld [vmem:[%s1073_s11 + $0x78] sm:$0xff] }
  0x1a   : > { %815 = vmatprep.subr.bf16.mxu0 %v908_v20  ;;  %843 = vmatprep.subr.bf16.mxu1 %v908_v20 }
  0x1b   : > { %885 = vrot.lane.b32.xlu0 %v884_v21, %s984_s27  ;;  %890 = vrot.lane.b32.xlu1 %v889_v24, %s984_s27 }
  0x1d   : > { %816 = vmatpush3.bf16.msra.mxu0 %v908_v20  ;;  %851 = vmatpush3.bf16.msra.mxu1 %v908_v20 }
  0x1e   : > { %817 = vmatprep.subr.bf16.mxu0 %v909_v27  ;;  %844 = vmatprep.subr.bf16.mxu1 %v909_v27 }
  0x1f   : > { %895 = vrot.lane.b32.xlu0 %v894_v28, %s984_s27  ;;  %900 = vrot.lane.b32.xlu1 %v899_v29, %s984_s27 }
  0x21   : > { %818 = vmatpush3.bf16.msra.mxu0 %v909_v27  ;;  %852 = vmatpush3.bf16.msra.mxu1 %v909_v27 }
  0x22   : > { %819 = vmatprep.subr.bf16.mxu0 %v910_v30  ;;  %845 = vmatprep.subr.bf16.mxu1 %v910_v30 }
  0x25   : > { %820 = vmatpush3.bf16.msra.mxu0 %v910_v30  ;;  %853 = vmatpush3.bf16.msra.mxu1 %v910_v30 }
  0x26   : > { %821 = vmatprep.subr.bf16.mxu0 %v911_v31  ;;  %846 = vmatprep.subr.bf16.mxu1 %v911_v31 }
  0x29   : > { %822 = vmatpush3.bf16.msra.mxu0 %v911_v31  ;;  %854 = vmatpush3.bf16.msra.mxu1 %v911_v31 }
  0x85   : > { %v866_v32 = vpop.permute.xlu0 %865  ;;  %v876_v37 = vpop.permute.xlu1 %875 }
  0x86   : > { %v868_v35 = vunpack.i.h.bf16 %v866_v32  ;;  %v867_v36 = vunpack.i.l.bf16 %v866_v32  ;;  %v878_v40 = vunpack.i.h.bf16 %v876_v37  ;;  %v877_v41 = vunpack.i.l.bf16 %v876_v37 }
  0x87   : > { %v336_v32 = vlaneseq }
  0x88   : > { %v294_v42 = vsel %vm293_vm0, %v197_v33, %v867_v36  ;;  %v295_v43 = vsel %vm293_vm0, %v198_v34, %v868_v35  ;;  %v296_v46 = vsel %vm293_vm0, %v199_v38, %v877_v41  ;;  %v297_v47 = vsel %vm293_vm0, %v200_v39, %v878_v40  ;;  %v334_v34 = vld [vmem:[%s1217_s2 + $0x40] sm:$0xf] }
  0x89   : > { %v871_v44 = vpop.permute.xlu0 %870  ;;  %v310_v45 = vpack.c.bf16 %v295_v43, %v294_v42  ;;  %v881_v52 = vpop.permute.xlu1 %880  ;;  %v311_v53 = vpack.c.bf16 %v297_v47, %v296_v46  ;;  %v1107_v33 = vshrl.u32 %v336_v32, 7  ;;  %v1112_v35 = vunpack.c.l.bf16 %v334_v34 }
  0x8a   : > { %v873_v50 = vunpack.i.h.bf16 %v871_v44  ;;  %v872_v51 = vunpack.i.l.bf16 %v871_v44  ;;  %v883_v56 = vunpack.i.h.bf16 %v881_v52  ;;  %v882_v57 = vunpack.i.l.bf16 %v881_v52 }
  0x8b   : > { %823 = vmatprep.mubr.bf16.mxu0 %v310_v45  ;;  %v338_v36 = vsub.s32 0, %v1107_v33 }
  0x8c   : > { %824 = vmatmul.mubr.bf16.vlgmr.msra.gmra.mxu0 %v311_v53  ;;  %v302_v58 = vsel %vm293_vm0, %v205_v48, %v872_v51  ;;  %v303_v59 = vsel %vm293_vm0, %v206_v49, %v873_v50  ;;  %v304_v62 = vsel %vm293_vm0, %v207_v54, %v882_v57  ;;  %v305_v63 = vsel %vm293_vm0, %v208_v55, %v883_v56 }
  0x8d   : > { %v886_v60 = vpop.permute.xlu0 %885  ;;  %v314_v61 = vpack.c.bf16 %v303_v59, %v302_v58  ;;  %v315_v4 = vpack.c.bf16 %v305_v63, %v304_v62  ;;  %v891_v5 = vpop.permute.xlu1 %890  ;;  %v1116_v37 = vrot.slane %v1112_v35, %v338_v36 }
  0x8e   : > { %v888_v2 = vunpack.i.h.bf16 %v886_v60  ;;  %v887_v3 = vunpack.i.l.bf16 %v886_v60  ;;  %v893_v8 = vunpack.i.h.bf16 %v891_v5  ;;  %v892_v9 = vunpack.i.l.bf16 %v891_v5 }
  0x8f   : > { %831 = vmatprep.mubr.bf16.mxu1 %v314_v61 }
  0x90   : > { %832 = vmatmul.mubr.bf16.vlgmr.msra.gmra.mxu1 %v315_v4  ;;  %v298_v10 = vsel %vm293_vm0, %v201_v0, %v887_v3  ;;  %v299_v11 = vsel %vm293_vm0, %v202_v1, %v888_v2  ;;  %v306_v16 = vsel %vm293_vm0, %v209_v6, %v892_v9  ;;  %v307_v17 = vsel %vm293_vm0, %v210_v7, %v893_v8 }
  0x91   : > { %v896_v12 = vpop.permute.xlu0 %895  ;;  %v312_v13 = vpack.c.bf16 %v299_v11, %v298_v10  ;;  %v901_v20 = vpop.permute.xlu1 %900  ;;  %v316_v21 = vpack.c.bf16 %v307_v17, %v306_v16  ;;  %v551_v6 = vsub.s32 1, %v1107_v33 }
  0x92   : > { %v898_v18 = vunpack.i.h.bf16 %v896_v12  ;;  %v897_v19 = vunpack.i.l.bf16 %v896_v12  ;;  %v903_v24 = vunpack.i.h.bf16 %v901_v20  ;;  %v902_v25 = vunpack.i.l.bf16 %v901_v20 }
  0x93   : > { %827 = vmatprep.mubr.bf16.mxu0 %v312_v13  ;;  %835 = vmatprep.mubr.bf16.mxu1 %v316_v21 }
  0x94   : > { %v300_v26 = vsel %vm293_vm0, %v203_v14, %v897_v19  ;;  %v301_v27 = vsel %vm293_vm0, %v204_v15, %v898_v18  ;;  %v308_v29 = vsel %vm293_vm0, %v211_v22, %v902_v25  ;;  %v309_v30 = vsel %vm293_vm0, %v212_v23, %v903_v24 }
  0x95   : > { %v313_v28 = vpack.c.bf16 %v301_v27, %v300_v26  ;;  %v317_v31 = vpack.c.bf16 %v309_v30, %v308_v29  ;;  %v1134_v18 = vrot.slane %v1112_v35, %v551_v6 }
  0x97   : > { %828 = vmatmul.mubr.bf16.gmra.mxu0 %v313_v28 }
  0x98   : > { %836 = vmatmul.mubr.bf16.gmra.mxu1 %v317_v31 }
 0x14c   : > { %v825_v38 = vpop.f32.mrf.mxu0 }
 0x14d   : > { %v431_v39 = vadd.f32 %v825_v38, %v1116_v37 }
 0x14e   : > { %v422_v40 = vpop.f32.mrf.mxu0 }
 0x14f   : > { %v487_v41 = vmul.f32 0.5, %v431_v39  ;;  %v423_v42 = vadd.f32 %v422_v40, %v1116_v37 }
 0x150   : > { %v826_v43 = vpop.f32.mrf.mxu0  ;;  %v833_v44 = vpop.f32.mrf.mxu1 }
 0x151   : > { %912 = vtanh.f32 %v487_v41  ;;  %v485_v45 = vmul.f32 0.5, %v423_v42  ;;  %v434_v46 = vadd.f32 %v826_v43, %v1116_v37  ;;  %v463_v47 = vadd.f32 %v833_v44, %v1116_v37 }
 0x152   : > { %v425_v48 = vpop.f32.mrf.mxu0  ;;  %v454_v49 = vpop.f32.mrf.mxu1 }
 0x153   : > { %914 = vtanh.f32 %v485_v45  ;;  %v488_v50 = vmul.f32 0.5, %v434_v46  ;;  %v495_v51 = vmul.f32 0.5, %v463_v47  ;;  %v426_v52 = vadd.f32 %v425_v48, %v1116_v37 }
 0x154   : > { %v455_v53 = vadd.f32 %v454_v49, %v1116_v37  ;;  %v834_v54 = vpop.f32.mrf.mxu1 }
 0x155   : > { %916 = vtanh.f32 %v488_v50  ;;  %v486_v55 = vmul.f32 0.5, %v426_v52  ;;  %v466_v56 = vadd.f32 %v834_v54, %v1116_v37 }
 0x156   : > { %918 = vtanh.f32 %v495_v51  ;;  %v493_v57 = vmul.f32 0.5, %v455_v53  ;;  %v457_v58 = vpop.f32.mrf.mxu1 }
 0x157   : > { %920 = vtanh.f32 %v486_v55  ;;  %v496_v59 = vmul.f32 0.5, %v466_v56  ;;  %v458_v60 = vadd.f32 %v457_v58, %v1116_v37  ;;  %v829_v61 = vpop.f32.mrf.mxu0 }
 0x158   : > { %922 = vtanh.f32 %v493_v57  ;;  %v447_v62 = vadd.f32 %v829_v61, %v1116_v37  ;;  %v837_v63 = vpop.f32.mrf.mxu1 }
 0x159   : > { %924 = vtanh.f32 %v496_v59  ;;  %v494_v0 = vmul.f32 0.5, %v458_v60  ;;  %v438_v1 = vpop.f32.mrf.mxu0  ;;  %v479_v20 = vadd.f32 %v837_v63, %v1116_v37 }
 0x15a   : > { %v491_v2 = vmul.f32 0.5, %v447_v62  ;;  %v439_v3 = vadd.f32 %v438_v1, %v1116_v37  ;;  %v470_v4 = vpop.f32.mrf.mxu1 }
 0x15b   : > { %926 = vtanh.f32 %v494_v0  ;;  %v830_v5 = vpop.f32.mrf.mxu0  ;;  %v471_v9 = vadd.f32 %v470_v4, %v1116_v37  ;;  %v499_v34 = vmul.f32 0.5, %v479_v20 }
 0x15c   : > { %928 = vtanh.f32 %v491_v2  ;;  %v489_v7 = vmul.f32 0.5, %v439_v3  ;;  %v450_v8 = vadd.f32 %v830_v5, %v1116_v37  ;;  %v838_v10 = vpop.f32.mrf.mxu1 }
 0x15d   : > { %v441_v11 = vpop.f32.mrf.mxu0  ;;  %v497_v22 = vmul.f32 0.5, %v471_v9  ;;  %v482_v26 = vadd.f32 %v838_v10, %v1116_v37 }
 0x15e   : > { %v913_v12 = vpop.eup %912  ;;  %v492_v13 = vmul.f32 0.5, %v450_v8  ;;  %v442_v14 = vadd.f32 %v441_v11, %v1116_v37  ;;  %v473_v15 = vpop.f32.mrf.mxu1  ;;  %930 = vtanh.f32 %v489_v7 }
 0x15f   : > { %v474_v16 = vadd.f32 %v473_v15, %v1116_v37  ;;  %v519_v17 = vadd.f32 1.0, %v913_v12  ;;  %v500_v40 = vmul.f32 0.5, %v482_v26 }
 0x160   : > { %v915_v19 = vpop.eup %914  ;;  %932 = vtanh.f32 %v492_v13  ;;  %v490_v21 = vmul.f32 0.5, %v442_v14 }
 0x161   : > { %v535_v23 = vmul.f32 0.5, %v519_v17  ;;  %v517_v24 = vadd.f32 1.0, %v915_v19  ;;  %v498_v27 = vmul.f32 0.5, %v474_v16 }
 0x162   : > { %v917_v25 = vpop.eup %916  ;;  %934 = vtanh.f32 %v490_v21 }
 0x163   : > { %v919_v28 = vpop.eup %918  ;;  %v555_v29 = vmul.f32 %v1134_v18, %v535_v23  ;;  %v533_v30 = vmul.f32 0.5, %v517_v24  ;;  %v520_v31 = vadd.f32 1.0, %v917_v25  ;;  %936 = vtanh.f32 %v497_v22 }
 0x164   : > { %v921_v32 = vpop.eup %920  ;;  %v527_v36 = vadd.f32 1.0, %v919_v28  ;;  %938 = vtanh.f32 %v498_v27  ;;  %v603_v27 = vsub.s32 2, %v1107_v33 }
 0x165   : > { %v923_v38 = vpop.eup %922  ;;  %573 = vadd.xlane.f32.xlu0 %v555_v29  ;;  %v553_v37 = vmul.f32 %v1134_v18, %v533_v30  ;;  %v536_v43 = vmul.f32 0.5, %v520_v31  ;;  %940 = vtanh.f32 %v499_v34  ;;  %v518_v48 = vadd.f32 1.0, %v921_v32 }
 0x166   : > { %v925_v39 = vpop.eup %924  ;;  %v543_v41 = vmul.f32 0.5, %v527_v36  ;;  %v525_v42 = vadd.f32 1.0, %v923_v38  ;;  %942 = vtanh.f32 %v500_v40  ;;  %v1156_v28 = vrot.slane %v1112_v35, %v603_v27 }
 0x167   : > { %v528_v44 = vadd.f32 1.0, %v925_v39  ;;  %v556_v52 = vmul.f32 %v1134_v18, %v536_v43  ;;  %v534_v56 = vmul.f32 0.5, %v518_v48 }
 0x168   : > { %v927_v45 = vpop.eup %926  ;;  %v563_v46 = vmul.f32 %v1134_v18, %v543_v41  ;;  %v541_v47 = vmul.f32 0.5, %v525_v42 }
 0x169   : > { %v929_v49 = vpop.eup %928  ;;  %569 = vadd.xlane.f32.xlu0 %v553_v37  ;;  %v544_v53 = vmul.f32 0.5, %v528_v44  ;;  %v526_v54 = vadd.f32 1.0, %v927_v45  ;;  %v554_v63 = vmul.f32 %v1134_v18, %v534_v56 }
 0x16a   : > { %589 = vadd.xlane.f32.xlu1 %v563_v46  ;;  %v561_v50 = vmul.f32 %v1134_v18, %v541_v47  ;;  %v523_v51 = vadd.f32 1.0, %v929_v49 }
 0x16b   : > { %v931_v55 = vpop.eup %930  ;;  %v564_v59 = vmul.f32 %v1134_v18, %v544_v53  ;;  %v542_v60 = vmul.f32 0.5, %v526_v54 }
 0x16c   : > { %v539_v58 = vmul.f32 0.5, %v523_v51  ;;  %v521_v0 = vadd.f32 1.0, %v931_v55 }
 0x16d   : > { %v933_v57 = vpop.eup %932  ;;  %575 = vadd.xlane.f32.xlu0 %v556_v52  ;;  %v562_v3 = vmul.f32 %v1134_v18, %v542_v60 }
 0x16e   : > { %585 = vadd.xlane.f32.xlu1 %v561_v50  ;;  %v524_v61 = vadd.f32 1.0, %v933_v57  ;;  %v559_v2 = vmul.f32 %v1134_v18, %v539_v58  ;;  %v537_v7 = vmul.f32 0.5, %v521_v0 }
 0x16f   : > { %v935_v62 = vpop.eup %934 }
 0x170   : > { %v937_v1 = vpop.eup %936  ;;  %v540_v4 = vmul.f32 0.5, %v524_v61  ;;  %v522_v5 = vadd.f32 1.0, %v935_v62  ;;  %v557_v14 = vmul.f32 %v1134_v18, %v537_v7 }
 0x171   : > { %591 = vadd.xlane.f32.xlu0 %v564_v59  ;;  %v939_v6 = vpop.eup %938  ;;  %v529_v8 = vadd.f32 1.0, %v937_v1 }
 0x172   : > { %571 = vadd.xlane.f32.xlu1 %v554_v63  ;;  %v941_v9 = vpop.eup %940  ;;  %v560_v10 = vmul.f32 %v1134_v18, %v540_v4  ;;  %v538_v11 = vmul.f32 0.5, %v522_v5  ;;  %v530_v12 = vadd.f32 1.0, %v939_v6 }
 0x173   : > { %v943_v13 = vpop.eup %942  ;;  %v545_v15 = vmul.f32 0.5, %v529_v8  ;;  %v531_v16 = vadd.f32 1.0, %v941_v9 }
 0x174   : > { %v558_v17 = vmul.f32 %v1134_v18, %v538_v11  ;;  %v546_v19 = vmul.f32 0.5, %v530_v12  ;;  %v532_v20 = vadd.f32 1.0, %v943_v13 }
 0x175   : > { %587 = vadd.xlane.f32.xlu0 %v562_v3  ;;  %v565_v21 = vmul.f32 %v1134_v18, %v545_v15  ;;  %v547_v22 = vmul.f32 0.5, %v531_v16 }
 0x176   : > { %581 = vadd.xlane.f32.xlu1 %v559_v2  ;;  %v566_v23 = vmul.f32 %v1134_v18, %v546_v19  ;;  %v548_v24 = vmul.f32 0.5, %v532_v20 }
 0x177   : > { %v567_v25 = vmul.f32 %v1134_v18, %v547_v22 }
 0x178   : > { %v568_v26 = vmul.f32 %v1134_v18, %v548_v24 }
 0x179   : > { %583 = vadd.xlane.f32.xlu0 %v560_v10 }
 0x17a   : > { %577 = vadd.xlane.f32.xlu1 %v557_v14 }
 0x17d   : > { %579 = vadd.xlane.f32.xlu0 %v558_v17 }
 0x17e   : > { %593 = vadd.xlane.f32.xlu1 %v565_v21 }
 0x181   : > { %595 = vadd.xlane.f32.xlu0 %v566_v23 }
 0x182   : > { %597 = vadd.xlane.f32.xlu1 %v567_v25 }
 0x185   : > { %599 = vadd.xlane.f32.xlu0 %v568_v26 }
 0x1ee   : > { %v574_v29 = vpop.xlane.xlu0 %573 }
 0x1ef   : > { %v607_v30 = vadd.f32 %v1156_v28, %v574_v29 }
 0x1f1   : > { %v623_v31 = vmul.f32 0.5, %v607_v30 }
 0x1f2   : > { %v570_v32 = vpop.xlane.xlu0 %569 }
 0x1f3   : > { %944 = vtanh.f32 %v623_v31  ;;  %v590_v34 = vpop.xlane.xlu1 %589  ;;  %v605_v36 = vadd.f32 %v1156_v28, %v570_v32 }
 0x1f4   : > { %v615_v38 = vadd.f32 %v1156_v28, %v590_v34 }
 0x1f5   : > { %v621_v39 = vmul.f32 0.5, %v605_v36 }
 0x1f6   : > { %v631_v40 = vmul.f32 0.5, %v615_v38  ;;  %v576_v18 = vpop.xlane.xlu0 %575 }
 0x1f7   : > { %946 = vtanh.f32 %v621_v39  ;;  %v586_v41 = vpop.xlane.xlu1 %585  ;;  %v608_v33 = vadd.f32 %v1156_v28, %v576_v18 }
 0x1f8   : > { %948 = vtanh.f32 %v631_v40  ;;  %v613_v35 = vadd.f32 %v1156_v28, %v586_v41 }
 0x1f9   : > { %v624_v42 = vmul.f32 0.5, %v608_v33 }
 0x1fa   : > { %v629_v37 = vmul.f32 0.5, %v613_v35  ;;  %v592_v43 = vpop.xlane.xlu0 %591 }
 0x1fb   : > { %950 = vtanh.f32 %v624_v42  ;;  %v572_v44 = vpop.xlane.xlu1 %571  ;;  %v616_v45 = vadd.f32 %v1156_v28, %v592_v43 }
 0x1fc   : > { %952 = vtanh.f32 %v629_v37  ;;  %v606_v46 = vadd.f32 %v1156_v28, %v572_v44 }
 0x1fd   : > { %v632_v47 = vmul.f32 0.5, %v616_v45 }
 0x1fe   : > { %v622_v48 = vmul.f32 0.5, %v606_v46  ;;  %v588_v49 = vpop.xlane.xlu0 %587 }
 0x1ff   : > { %954 = vtanh.f32 %v632_v47  ;;  %v582_v50 = vpop.xlane.xlu1 %581  ;;  %v614_v51 = vadd.f32 %v1156_v28, %v588_v49 }
 0x200   : > { %v945_v52 = vpop.eup %944  ;;  %956 = vtanh.f32 %v622_v48  ;;  %v611_v53 = vadd.f32 %v1156_v28, %v582_v50 }
 0x201   : > { %v655_v54 = vadd.f32 1.0, %v945_v52  ;;  %v630_v55 = vmul.f32 0.5, %v614_v51 }
 0x202   : > { %v627_v56 = vmul.f32 0.5, %v611_v53  ;;  %v584_v57 = vpop.xlane.xlu0 %583 }
 0x203   : > { %v671_v58 = vmul.f32 0.5, %v655_v54  ;;  %958 = vtanh.f32 %v630_v55  ;;  %v578_v59 = vpop.xlane.xlu1 %577  ;;  %v612_v60 = vadd.f32 %v1156_v28, %v584_v57 }
 0x204   : > { %v947_v61 = vpop.eup %946  ;;  %960 = vtanh.f32 %v627_v56  ;;  %v609_v62 = vadd.f32 %v1156_v28, %v578_v59 }
 0x205   : > { %v949_v63 = vpop.eup %948  ;;  %688 = vst.msk [vmem:[%s1171_s17 + $0x10] sm:$0xff] %vm685_vm1, %v671_v58  ;;  %v653_v0 = vadd.f32 1.0, %v947_v61  ;;  %v628_v1 = vmul.f32 0.5, %v612_v60 }
 0x206   : > { %v663_v2 = vadd.f32 1.0, %v949_v63  ;;  %v625_v3 = vmul.f32 0.5, %v609_v62  ;;  %v580_v4 = vpop.xlane.xlu0 %579 }
 0x207   : > { %v669_v5 = vmul.f32 0.5, %v653_v0  ;;  %962 = vtanh.f32 %v628_v1  ;;  %v594_v6 = vpop.xlane.xlu1 %593  ;;  %v610_v7 = vadd.f32 %v1156_v28, %v580_v4 }
 0x208   : > { %v951_v8 = vpop.eup %950  ;;  %v679_v9 = vmul.f32 0.5, %v663_v2  ;;  %964 = vtanh.f32 %v625_v3  ;;  %v617_v10 = vadd.f32 %v1156_v28, %v594_v6 }
 0x209   : > { %v953_v11 = vpop.eup %952  ;;  %686 = vst.msk [vmem:[%s1171_s17] sm:$0xff] %vm685_vm1, %v669_v5  ;;  %v656_v12 = vadd.f32 1.0, %v951_v8  ;;  %v626_v13 = vmul.f32 0.5, %v610_v7 }
 0x20a   : > { %696 = vst.msk [vmem:[%s1171_s17 + $0x50] sm:$0xff] %vm685_vm1, %v679_v9  ;;  %v661_v14 = vadd.f32 1.0, %v953_v11  ;;  %v633_v15 = vmul.f32 0.5, %v617_v10  ;;  %v596_v16 = vpop.xlane.xlu0 %595 }
 0x20b   : > { %v672_v17 = vmul.f32 0.5, %v656_v12  ;;  %966 = vtanh.f32 %v626_v13  ;;  %v598_v19 = vpop.xlane.xlu1 %597  ;;  %v618_v20 = vadd.f32 %v1156_v28, %v596_v16 }
 0x20c   : > { %v955_v21 = vpop.eup %954  ;;  %v677_v22 = vmul.f32 0.5, %v661_v14  ;;  %968 = vtanh.f32 %v633_v15  ;;  %v619_v23 = vadd.f32 %v1156_v28, %v598_v19 }
 0x20d   : > { %v957_v24 = vpop.eup %956  ;;  %689 = vst.msk [vmem:[%s1171_s17 + $0x18] sm:$0xff] %vm685_vm1, %v672_v17  ;;  %v664_v25 = vadd.f32 1.0, %v955_v21  ;;  %v634_v26 = vmul.f32 0.5, %v618_v20 }
 0x20e   : > { %694 = vst.msk [vmem:[%s1171_s17 + $0x40] sm:$0xff] %vm685_vm1, %v677_v22  ;;  %v654_v27 = vadd.f32 1.0, %v957_v24  ;;  %v635_v29 = vmul.f32 0.5, %v619_v23  ;;  %v600_v30 = vpop.xlane.xlu0 %599 }
 0x20f   : > { %v680_v31 = vmul.f32 0.5, %v664_v25  ;;  %970 = vtanh.f32 %v634_v26  ;;  %v620_v32 = vadd.f32 %v1156_v28, %v600_v30 }
 0x210   : > { %v959_v34 = vpop.eup %958  ;;  %v670_v36 = vmul.f32 0.5, %v654_v27  ;;  %972 = vtanh.f32 %v635_v29 }
 0x211   : > { %v961_v38 = vpop.eup %960  ;;  %697 = vst.msk [vmem:[%s1171_s17 + $0x58] sm:$0xff] %vm685_vm1, %v680_v31  ;;  %v662_v39 = vadd.f32 1.0, %v959_v34  ;;  %v636_v40 = vmul.f32 0.5, %v620_v32 }
 0x212   : > { %687 = vst.msk [vmem:[%s1171_s17 + $0x8] sm:$0xff] %vm685_vm1, %v670_v36  ;;  %v659_v18 = vadd.f32 1.0, %v961_v38 }
 0x213   : > { %v678_v41 = vmul.f32 0.5, %v662_v39  ;;  %974 = vtanh.f32 %v636_v40 }
 0x214   : > { %v963_v33 = vpop.eup %962  ;;  %v675_v35 = vmul.f32 0.5, %v659_v18 }
 0x215   : > { %v965_v42 = vpop.eup %964  ;;  %695 = vst.msk [vmem:[%s1171_s17 + $0x48] sm:$0xff] %vm685_vm1, %v678_v41  ;;  %v660_v28 = vadd.f32 1.0, %v963_v33 }
 0x216   : > { %692 = vst.msk [vmem:[%s1171_s17 + $0x30] sm:$0xff] %vm685_vm1, %v675_v35  ;;  %v657_v37 = vadd.f32 1.0, %v965_v42 }
 0x217   : > { %v676_v43 = vmul.f32 0.5, %v660_v28 }
 0x218   : > { %v967_v44 = vpop.eup %966  ;;  %v673_v45 = vmul.f32 0.5, %v657_v37 }
 0x219   : > { %v969_v46 = vpop.eup %968  ;;  %693 = vst.msk [vmem:[%s1171_s17 + $0x38] sm:$0xff] %vm685_vm1, %v676_v43  ;;  %v658_v47 = vadd.f32 1.0, %v967_v44 }
 0x21a   : > { %690 = vst.msk [vmem:[%s1171_s17 + $0x20] sm:$0xff] %vm685_vm1, %v673_v45  ;;  %v665_v48 = vadd.f32 1.0, %v969_v46 }
 0x21b   : > { %v674_v49 = vmul.f32 0.5, %v658_v47 }
 0x21c   : > { %v971_v50 = vpop.eup %970  ;;  %v681_v51 = vmul.f32 0.5, %v665_v48 }
 0x21d   : > { %v973_v52 = vpop.eup %972  ;;  %691 = vst.msk [vmem:[%s1171_s17 + $0x28] sm:$0xff] %vm685_vm1, %v674_v49  ;;  %v666_v53 = vadd.f32 1.0, %v971_v50 }
 0x21e   : > { %698 = vst.msk [vmem:[%s1171_s17 + $0x60] sm:$0xff] %vm685_vm1, %v681_v51  ;;  %v667_v54 = vadd.f32 1.0, %v973_v52 }
 0x21f   : > { %v682_v55 = vmul.f32 0.5, %v666_v53 }
 0x220   : > { %v975_v56 = vpop.eup %974  ;;  %v683_v57 = vmul.f32 0.5, %v667_v54 }
 0x221   : > { %699 = vst.msk [vmem:[%s1171_s17 + $0x68] sm:$0xff] %vm685_vm1, %v682_v55  ;;  %v668_v58 = vadd.f32 1.0, %v975_v56 }
 0x222   : > { %700 = vst.msk [vmem:[%s1171_s17 + $0x70] sm:$0xff] %vm685_vm1, %v683_v57 }
 0x223   : > { %v684_v59 = vmul.f32 0.5, %v668_v58 }
 0x225   : > { %701 = vst.msk [vmem:[%s1171_s17 + $0x78] sm:$0xff] %vm685_vm1, %v684_v59 }
 0x226 PF: > { %s13_s12 = sadd.s32 1, %s982_s12  }
 0x227   : > { %p10_p4 = scmp.ge.s32.totalorder %s13_s12, 4  }
 0x229   :  { %12 = sbr.rel (!%p10_p4) target bundleno = 1 (0x1), region = 65 }

</bundles_post_ra>
